<compile_context>
chip_gen: v7x
topology: tpu7x:2x2x1
jax: 0.10.0
libtpu: 0.0.40
codegen_flags: <defaults>
</compile_context>

<pallas_src>
import functools

import jax
import jax.numpy as jnp
from jax.experimental import pallas as pl
from jax.experimental.pallas import tpu as pltpu

# Per-batch (C, HW) slab above this -> use the HW-tiled two-kernel path.
_FUSED_BLOCK_BYTES_LIMIT = 4 * 1024 * 1024
# Target bytes per HW tile in the tiled path.
_TILE_BYTES_BUDGET = 2 * 1024 * 1024
# Raise v5e's 16 MiB scoped default; safe on v6e/v7x as well.
_VMEM_LIMIT_BYTES = 32 * 1024 * 1024


# ----------------------------------------------------------------------------
# Shared helper: fc(avg) + fc(max) -> sigmoid, on (C, 1) column vectors.
# ----------------------------------------------------------------------------
def _fc_sigmoid(avg, mx, w1, w2):
    # avg, mx: (C, 1) f32 ; w1: (Cr, C) ; w2: (C, Cr)
    pooled = jnp.concatenate([avg, mx], axis=1)                     # (C, 2)
    h = jnp.dot(w1.astype(jnp.float32), pooled,
                preferred_element_type=jnp.float32)                 # (Cr, 2)
    h = jnp.maximum(h, 0.0)
    out = jnp.dot(w2.astype(jnp.float32), h,
                  preferred_element_type=jnp.float32)               # (C, 2)
    # fc is linear+relu applied per column, so column 0 = fc(avg), col 1 = fc(max)
    return jax.nn.sigmoid(out[:, 0:1] + out[:, 1:2])                # (C, 1)


# ----------------------------------------------------------------------------
# Path 1: fully fused kernel (single read + single write of x), grid = (N,)
# ----------------------------------------------------------------------------
def _fused_kernel(x_ref, w1_ref, w2_ref, o_ref, *, hw):
    x = x_ref[0]                                                    # (C, HW), native dtype
    # f32 accumulation without keeping a full f32 copy of the block alive.
    s = jnp.sum(x, axis=1, keepdims=True, dtype=jnp.float32)        # (C, 1)
    avg = s * (1.0 / hw)
    mx = jnp.max(x, axis=1, keepdims=True).astype(jnp.float32)      # (C, 1)
    att = _fc_sigmoid(avg, mx, w1_ref[...], w2_ref[...])            # (C, 1) f32
    # multiply + store in native dtype (lane-dense along HW)
    o_ref[0] = x * att.astype(o_ref.dtype)


def _fused_call(x_k, w1, w2):
    N, C, HW = x_k.shape
    Cr = w1.shape[0]
    itemsize = jnp.dtype(x_k.dtype).itemsize
    cost = pl.CostEstimate(
        flops=2 * N * HW * C + 4 * N * C * Cr * 2,
        transcendentals=N * C,
        bytes_accessed=2 * N * HW * C * itemsize + 2 * C * Cr * 4,
    )
    kernel = functools.partial(_fused_kernel, hw=HW)
    return pl.pallas_call(
        kernel,
        out_shape=jax.ShapeDtypeStruct((N, C, HW), x_k.dtype),
        grid_spec=pltpu.PrefetchScalarGridSpec(
            num_scalar_prefetch=0,
            grid=(N,),
            in_specs=[
                pl.BlockSpec((1, C, HW), lambda n: (n, 0, 0)),
                pl.BlockSpec((Cr, C), lambda n: (0, 0)),
                pl.BlockSpec((C, Cr), lambda n: (0, 0)),
            ],
            out_specs=pl.BlockSpec((1, C, HW), lambda n: (n, 0, 0)),
        ),
        compiler_params=pltpu.CompilerParams(
            dimension_semantics=("parallel",),
            vmem_limit_bytes=_VMEM_LIMIT_BYTES,
        ),
        cost_estimate=cost,
    )(x_k, w1, w2)


# ----------------------------------------------------------------------------
# Path 2a: HW-tiled pool + FC reduction kernel -> att (N, C, 1), grid = (N, T)
# ----------------------------------------------------------------------------
def _pool_fc_kernel(x_ref, w1_ref, w2_ref, att_ref, sum_sc, max_sc, *, hw, tile):
    t = pl.program_id(1)

    @pl.when(t == 0)
    def _():
        sum_sc[...] = jnp.zeros_like(sum_sc)
        max_sc[...] = jnp.full_like(max_sc, -jnp.inf)

    x = x_ref[0]                                                    # (C, tile)
    # Mask lanes beyond the true HW on the (possibly partial) last tile.
    lane = jax.lax.broadcasted_iota(jnp.int32, x.shape, 1) + t * tile
    valid = lane < hw
    xf = x.astype(jnp.float32)
    sum_sc[...] += jnp.sum(jnp.where(valid, xf, 0.0), axis=1, keepdims=True)
    max_sc[...] = jnp.maximum(
        max_sc[...],
        jnp.max(jnp.where(valid, xf, -jnp.inf), axis=1, keepdims=True))

    @pl.when(t == pl.num_programs(1) - 1)
    def _():
        avg = sum_sc[...] * (1.0 / hw)                              # true HW divisor
        att = _fc_sigmoid(avg, max_sc[...], w1_ref[...], w2_ref[...])
        att_ref[0] = att.astype(att_ref.dtype)


def _pool_fc_call(x_k, w1, w2, tile):
    N, C, HW = x_k.shape
    Cr = w1.shape[0]
    n_t = pl.cdiv(HW, tile)
    itemsize = jnp.dtype(x_k.dtype).itemsize
    cost = pl.CostEstimate(
        flops=2 * N * HW * C + 4 * N * C * Cr * 2,
        transcendentals=N * C,
        bytes_accessed=N * HW * C * itemsize + N * C * 4 + 2 * C * Cr * 4,
    )
    kernel = functools.partial(_pool_fc_kernel, hw=HW, tile=tile)
    return pl.pallas_call(
        kernel,
        out_shape=jax.ShapeDtypeStruct((N, C, 1), jnp.float32),
        grid_spec=pltpu.PrefetchScalarGridSpec(
            num_scalar_prefetch=0,
            grid=(N, n_t),
            in_specs=[
                pl.BlockSpec((1, C, tile), lambda n, t: (n, 0, t)),
                pl.BlockSpec((Cr, C), lambda n, t: (0, 0)),
                pl.BlockSpec((C, Cr), lambda n, t: (0, 0)),
            ],
            out_specs=pl.BlockSpec((1, C, 1), lambda n, t: (n, 0, 0)),
            scratch_shapes=[pltpu.VMEM((C, 1), jnp.float32),
                            pltpu.VMEM((C, 1), jnp.float32)],
        ),
        compiler_params=pltpu.CompilerParams(
            dimension_semantics=("parallel", "arbitrary"),
            vmem_limit_bytes=_VMEM_LIMIT_BYTES,
        ),
        cost_estimate=cost,
    )(x_k, w1, w2)


# ----------------------------------------------------------------------------
# Path 2b: HW-tiled apply kernel (x * att), fully parallel grid = (N, T)
# ----------------------------------------------------------------------------
def _apply_kernel(x_ref, att_ref, o_ref):
    # x_ref: (1, C, tile); att_ref: (1, C, 1) -> broadcast over lanes.
    o_ref[0] = x_ref[0] * att_ref[0].astype(o_ref.dtype)


def _apply_call(x_k, att, tile):
    N, C, HW = x_k.shape
    n_t = pl.cdiv(HW, tile)
    itemsize = jnp.dtype(x_k.dtype).itemsize
    cost = pl.CostEstimate(
        flops=N * HW * C,
        transcendentals=0,
        bytes_accessed=2 * N * HW * C * itemsize + N * C * 4,
    )
    return pl.pallas_call(
        _apply_kernel,
        out_shape=jax.ShapeDtypeStruct((N, C, HW), x_k.dtype),
        grid_spec=pltpu.PrefetchScalarGridSpec(
            num_scalar_prefetch=0,
            grid=(N, n_t),
            in_specs=[
                pl.BlockSpec((1, C, tile), lambda n, t: (n, 0, t)),
                pl.BlockSpec((1, C, 1), lambda n, t: (n, 0, 0)),
            ],
            out_specs=pl.BlockSpec((1, C, tile), lambda n, t: (n, 0, t)),
        ),
        compiler_params=pltpu.CompilerParams(
            dimension_semantics=("parallel", "parallel"),
            vmem_limit_bytes=_VMEM_LIMIT_BYTES,
        ),
        cost_estimate=cost,
    )(x_k, att)


# ----------------------------------------------------------------------------
# Public wrapper (matches PyTorch NCHW semantics). No data-movement transposes.
# ----------------------------------------------------------------------------
def _pick_hw_tile(C, HW, itemsize):
    tile = max(128, (_TILE_BYTES_BUDGET // (C * itemsize)) // 128 * 128)
    return min(tile, pl.cdiv(HW, 128) * 128)


def channel_attention(x_nchw: jax.Array, w1: jax.Array, w2: jax.Array,
                      *, force_hw_tile=None) -> jax.Array:
    """x_nchw: (N, C, H, W); w1: (Cr, C); w2: (C, Cr). Returns (N, C, H, W)."""
    N, C, H, W = x_nchw.shape
    HW = H * W
    x_k = x_nchw.reshape(N, C, HW)           # free reshape, no transpose
    itemsize = jnp.dtype(x_nchw.dtype).itemsize

    if force_hw_tile is None and C * HW * itemsize <= _FUSED_BLOCK_BYTES_LIMIT:
        out_k = _fused_call(x_k, w1, w2)
    else:
        tile = force_hw_tile if force_hw_tile is not None else _pick_hw_tile(C, HW, itemsize)
        att = _pool_fc_call(x_k, w1, w2, tile)    # (N, C, 1) float32
        out_k = _apply_call(x_k, att, tile)

    return out_k.reshape(N, C, H, W)


# ----------------------------------------------------------------------------
# Pure-JAX reference (mirrors the PyTorch forward)
# ----------------------------------------------------------------------------
def _reference(x, w1, w2):
    avg = jnp.mean(x, axis=(2, 3), keepdims=True)          # (N, C, 1, 1)
    mx = jnp.max(x, axis=(2, 3), keepdims=True)            # (N, C, 1, 1)

    def fc(v):
        v = v[:, :, 0, 0]                                  # (N, C)
        h = jnp.maximum(v @ w1.T, 0.0)                     # (N, Cr)
        return (h @ w2.T)[:, :, None, None]                # (N, C, 1, 1)

    att = jax.nn.sigmoid(fc(avg) + fc(mx))
    return x * att


if __name__ == "__main__":
    key = jax.random.PRNGKey(0)
    reduction = 16

    # ---- Test 1: small feature map -> fully fused single-kernel path ----
    N, C, H, W = 2, 32, 16, 16
    Cr = C // reduction
    kx, k1, k2, kx2 = jax.random.split(key, 4)
    x = jax.random.normal(kx, (N, C, H, W), dtype=jnp.float32)
    w1 = jax.random.normal(k1, (Cr, C), dtype=jnp.float32) * 0.1   # Conv2d(C, Cr, 1)
    w2 = jax.random.normal(k2, (C, Cr), dtype=jnp.float32) * 0.1   # Conv2d(Cr, C, 1)

    y = channel_attention(x, w1, w2)
    jax.block_until_ready(y)
    assert y.shape == (N, C, H, W)
    assert jnp.allclose(y, _reference(x, w1, w2), atol=1e-5, rtol=1e-5), \
        "fused path mismatch vs reference"

    # ---- Test 2: force the HW-tiled (pool+FC, then apply) path, with a ----
    # ---- partial last tile (HW=400, tile=256) to exercise masking.     ----
    N2, C2, H2, W2 = 2, 32, 20, 20
    x2 = jax.random.normal(kx2, (N2, C2, H2, W2), dtype=jnp.float32)
    y2 = channel_attention(x2, w1, w2, force_hw_tile=256)
    jax.block_until_ready(y2)
    assert y2.shape == (N2, C2, H2, W2)
    assert jnp.allclose(y2, _reference(x2, w1, w2), atol=1e-5, rtol=1e-5), \
        "tiled path mismatch vs reference"

    print("KERNEL_OK")
</pallas_src>

<mosaic_0001>
module attributes {stable_mosaic.version = 11 : i64} {
  func.func @_fused_kernel(%arg0: i32, %arg1: memref<1x32x256xf32, #tpu.memory_space<vmem>>, %arg2: memref<2x32xf32, #tpu.memory_space<vmem>>, %arg3: memref<32x2xf32, #tpu.memory_space<vmem>>, %arg4: memref<1x32x256xf32, #tpu.memory_space<vmem>>) attributes {dimension_semantics = [#tpu.dimension_semantics<parallel>], iteration_bounds = array<i64: 2>, scalar_prefetch = 0 : i64, scratch_operands = 0 : i64, tpu.core_type = #tpu.core_type<tc>, window_params = [{transform_indices = @transform_0, window_bounds = array<i64: 1, 32, 256>}, {pipeline_mode = #tpu.pipeline_mode<synchronous>, transform_indices = @transform_1, window_bounds = array<i64: 2, 32>}, {pipeline_mode = #tpu.pipeline_mode<synchronous>, transform_indices = @transform_2, window_bounds = array<i64: 32, 2>}, {transform_indices = @transform_3, window_bounds = array<i64: 1, 32, 256>}]} {
    %c0 = arith.constant 0 : index
    %c0_0 = arith.constant 0 : index
    %c0_1 = arith.constant 0 : index
    %0 = vector.load %arg1[%c0, %c0_0, %c0_1] : memref<1x32x256xf32, #tpu.memory_space<vmem>>, vector<1x32x256xf32>
    %1 = vector.shape_cast %0 : vector<1x32x256xf32> to vector<32x256xf32>
    %cst = arith.constant dense<0.000000e+00> : vector<32xf32>
    %2 = vector.multi_reduction <add>, %1, %cst [1] : vector<32x256xf32> to vector<32xf32>
    %3 = vector.shape_cast %2 : vector<32xf32> to vector<32x1xf32>
    %cst_2 = arith.constant 3.906250e-03 : f32
    %4 = vector.broadcast %cst_2 : f32 to vector<32x1xf32>
    %5 = arith.mulf %3, %4 : vector<32x1xf32>
    %cst_3 = arith.constant dense<0xFF800000> : vector<32xf32>
    %6 = vector.multi_reduction <maximumf>, %1, %cst_3 [1] : vector<32x256xf32> to vector<32xf32>
    %7 = vector.shape_cast %6 : vector<32xf32> to vector<32x1xf32>
    %c0_4 = arith.constant 0 : index
    %c0_5 = arith.constant 0 : index
    %8 = vector.load %arg2[%c0_4, %c0_5] : memref<2x32xf32, #tpu.memory_space<vmem>>, vector<2x32xf32>
    %c0_6 = arith.constant 0 : index
    %c0_7 = arith.constant 0 : index
    %9 = vector.load %arg3[%c0_6, %c0_7] : memref<32x2xf32, #tpu.memory_space<vmem>>, vector<32x2xf32>
    %10 = tpu.concatenate %5, %7 in 1 : vector<32x1xf32>, vector<32x1xf32> -> vector<32x2xf32>
    %cst_8 = arith.constant dense<0.000000e+00> : vector<2x2xf32>
    %11 = tpu.matmul %8, %10, %cst_8 {dimension_numbers = #tpu.dot_dimension_numbers<[1], [0], [0], [1], [0, 0, 1, 1], [], []>} : vector<2x32xf32>, vector<32x2xf32>, vector<2x2xf32> -> vector<2x2xf32>
    %cst_9 = arith.constant 0.000000e+00 : f32
    %12 = vector.broadcast %cst_9 : f32 to vector<2x2xf32>
    %13 = arith.maximumf %11, %12 : vector<2x2xf32>
    %cst_10 = arith.constant dense<0.000000e+00> : vector<32x2xf32>
    %14 = tpu.matmul %9, %13, %cst_10 {dimension_numbers = #tpu.dot_dimension_numbers<[1], [0], [0], [1], [0, 0, 1, 1], [], []>} : vector<32x2xf32>, vector<2x2xf32>, vector<32x2xf32> -> vector<32x2xf32>
    %15 = vector.extract_strided_slice %14 {offsets = [0, 0], sizes = [32, 1], strides = [1, 1]} : vector<32x2xf32> to vector<32x1xf32>
    %16 = vector.extract_strided_slice %14 {offsets = [0, 1], sizes = [32, 1], strides = [1, 1]} : vector<32x2xf32> to vector<32x1xf32>
    %17 = arith.addf %15, %16 : vector<32x1xf32>
    %18 = arith.negf %17 : vector<32x1xf32>
    %19 = math.exp %18 : vector<32x1xf32>
    %cst_11 = arith.constant 1.000000e+00 : f32
    %20 = vector.broadcast %cst_11 : f32 to vector<32x1xf32>
    %21 = arith.addf %20, %19 : vector<32x1xf32>
    %22 = arith.divf %20, %21 : vector<32x1xf32>
    %23 = vector.broadcast %22 : vector<32x1xf32> to vector<32x256xf32>
    %24 = arith.mulf %1, %23 : vector<32x256xf32>
    %c0_12 = arith.constant 0 : index
    %c0_13 = arith.constant 0 : index
    %c0_14 = arith.constant 0 : index
    %25 = vector.load %arg4[%c0_12, %c0_13, %c0_14] : memref<1x32x256xf32, #tpu.memory_space<vmem>>, vector<1x32x256xf32>
    %26 = vector.shape_cast %25 : vector<1x32x256xf32> to vector<32x256xf32>
    %27 = vector.shape_cast %24 : vector<32x256xf32> to vector<1x32x256xf32>
    tpu.vector_store %arg4[%c0_12, %c0_13, %c0_14], %27 {strides = array<i32>} : memref<1x32x256xf32, #tpu.memory_space<vmem>>, vector<1x32x256xf32>,
    return
  }
  func.func @transform_0(%arg0: i32) -> (i32, i32, i32) {
    %c0_i32 = arith.constant 0 : i32
    %c0_i32_0 = arith.constant 0 : i32
    %c0_i32_1 = arith.constant 0 : i32
    return %arg0, %c0_i32, %c0_i32_0 : i32, i32, i32
  }
  func.func @transform_1(%arg0: i32) -> (i32, i32) {
    %c0_i32 = arith.constant 0 : i32
    %c0_i32_0 = arith.constant 0 : i32
    %c0_i32_1 = arith.constant 0 : i32
    return %c0_i32, %c0_i32_0 : i32, i32
  }
  func.func @transform_2(%arg0: i32) -> (i32, i32) {
    %c0_i32 = arith.constant 0 : i32
    %c0_i32_0 = arith.constant 0 : i32
    %c0_i32_1 = arith.constant 0 : i32
    return %c0_i32, %c0_i32_0 : i32, i32
  }
  func.func @transform_3(%arg0: i32) -> (i32, i32, i32) {
    %c0_i32 = arith.constant 0 : i32
    %c0_i32_0 = arith.constant 0 : i32
    %c0_i32_1 = arith.constant 0 : i32
    return %arg0, %c0_i32, %c0_i32_0 : i32, i32, i32
  }
}

</mosaic_0001>

<bundles_post_ra>
// kernel: tpu_custom_call.1
= control target key start
LH: loop header
LB: loop body
LE: loop exit
PB: predicated region body
PF: predicated region fallthrough
CT: control target
= control target key end

     0   :  { %8 = vsyncpa [#allocation3], 0  ;;  %s1063_s0 = inlined_call_operand.hbm [shape: f32[2,32,256], index: 0, kind: input, shape index: {}]   ;;  %s1064_s1 = inlined_call_operand.vmem [shape: f32[2,32], index: 1, kind: input, shape index: {}]   ;;  %s1065_s2 = inlined_call_operand.vmem [shape: f32[32,2], index: 2, kind: input, shape index: {}]   ;;  %s1066_s3 = inlined_call_operand.hbm [shape: f32[2,32,256], index: 3, kind: output, shape index: {}]  }
   0x1   :  { %10 = vsyncpa [#allocation3 + $0x1], 0 }
   0x2   :  { %11 = vsyncpa [#allocation4], 0 }
   0x3   :  { %13 = vsyncpa [#allocation4 + $0x1], 0  ;;  %s842_s12 = smov 0   ;;  %s844_s13 = smov 0  }
   0x4   :  { %s846_s14 = smov 0   ;;  %s848_s15 = smov 0  }
   0x5 LB: > { %s863_s16 = sadd.s32 4294967295, %s809_s15   ;;  %s579_s17 = sadd.s32 4294967294, %s809_s15   ;;  %s809_s15 = sphi %s848_s15, %s1079_s15   ;;  %s805_s14 = sphi %s846_s14, %s1078_s14   ;;  %s801_s13 = sphi %s844_s13, %s1077_s13   ;;  %s797_s12 = sphi %s842_s12, %s1076_s12  }
   0x6   : > { %s867_s18 = sadd.s32 1, %s809_s15   ;;  %s26_s19 = sadd.s32 1, %s805_s14 }
   0x7   : > { %s23_s20 = ssub.s32 %s809_s15, %s867_s18  ;;  %p33_p0 = scmp.ne.s32.totalorder %s805_s14, %s801_s13 }
   0x8   : > { %p24_p1 = scmp.eq.s32.totalorder %s23_s20, 0  ;;  %p34_p2 = scmp.eq.s32.totalorder %s809_s15, 0 }
   0x9   : > { %p39_p3 = scmp.ne.s32.totalorder %s801_s13, %s797_s12  ;;  %p40_p4 = scmp.eq.s32.totalorder %s863_s16, 0 }
   0xa   : > { %s879_s21 = scalar_select %p24_p1, %s805_s14, %s26_s19  }
   0xb   : > { %p881_p5 = por %p34_p2, %p33_p0  ;;  %p885_p6 = por %p40_p4, %p39_p3 }
   0xc   : > { %p105_p7 = scmp.eq.s32.totalorder %s863_s16, 1  ;;  %p111_p8 = scmp.eq.s32.totalorder %s579_s17, 1 }
   0xd   : > { %p652_p10 = scmp.lt.s32.totalorder %s809_s15, 2  ;;  %s137_s26 = sand.u32 1, %s805_s14  }
   0xe   : > { %p892_p11 = por %p105_p7, %p33_p0  ;;  %p896_p12 = por %p111_p8, %p39_p3 }
   0xf   : > { %s603_s27 = sshll.u32 %s809_s15, 10  ;;  %s582_s28 = sshll.u32 %s137_s26, 6 }
  0x10   : > { %s1070_s24 = scalar_select %p892_p11, 1, 0 }
  0x11   : > { %s1071_s25 = scalar_select %p896_p12, 1, 0 }
  0x12   : > { %s905_s4 = scalar_lea.hbm %s1063_s0, %s603_s27  ;;  %s141_s5 = scalar_lea.vmem [#allocation2], %s582_s28 }
  0x13   : > { %s148_s6 = sshll.u32 %s141_s5, 4  ;;  %p909_p13 = pnand %p652_p10, %p881_p5  ;;  %s913_s6 = int_to_ptr.vmem [resolvable:$true] %s148_s6 }
  0x14   : > { %s915_s8 = scalar_lea.sflag [#allocation3], %s137_s26  ;;  %s713_s9 = scalar_lea.hbm %s905_s4, 1024 }
  0x15   : > { %p714_p0 = scmp.ne.s32.totalorder %s905_s4, %s713_s9  ;;  %p715_p1 = pneg %p909_p13 }
  0x16   : > { %s718_s17 = scalar_lea.hbm %s1063_s0, 2048  ;;  %p719_p4 = scmp.lt.u32.totalorder %s905_s4, %s1063_s0 }
  0x17   : > { %p716_p2 = pnand %p715_p1, %p714_p0  ;;  %p720_p5 = scmp.lt.u32.totalorder %s718_s17, %s713_s9 }
  0x18   : > { %p722_p8 = scmp.lt.u32.totalorder %s713_s9, %s905_s4 }
  0x19   : > { %p717_p3 = pneg %p716_p2  ;;  %p721_p7 = por %p720_p5, %p719_p4 }
  0x1b   : > { %p723_p10 = por %p722_p8, %p721_p7 }
  0x1d   : > { %p724_p9 = pnand %p723_p10, %p717_p3 }
  0x1f   : > { %727 = shalt.err (!%p724_p9)
}
  0x20   : > { %s728_s22 = scalar_lea.vmem %s913_s6, 1024  ;;  %s811_s26 = smov [#allocation2]  }
  0x21   : > { %p729_p0 = scmp.ne.s32.totalorder %s913_s6, %s728_s22  ;;  %s733_s27 = sshll.u32 %s811_s26, 4  ;;  %s734_s27 = int_to_ptr.vmem [resolvable:$false] %s733_s27 }
  0x22   : > { %s735_s28 = scalar_lea.vmem %s734_s27, 2048  ;;  %p736_p11 = scmp.lt.s32.totalorder %s913_s6, %s734_s27 }
  0x23   : > { %p731_p2 = pnand %p729_p0, %p715_p1  ;;  %p737_p4 = scmp.lt.s32.totalorder %s735_s28, %s728_s22 }
  0x25   : > { %p732_p12 = pneg %p731_p2  ;;  %p738_p5 = por %p737_p4, %p736_p11 }
  0x27   : > { %p739_p7 = pnand %p738_p5, %p732_p12 }
  0x29   : > { %742 = shalt.err (!%p739_p7)
}
  0x2a   : > { %s812_s29 = smov 256   ;;  %s813_s30 = smov 16  }
  0x2b   : > { %647 = dma.hbm_to_vmem [thread:$0]  (!%p909_p13), %s905_s4, 1024, %s913_s6, %s915_s8, %s812_s29, %s812_s29, %s813_s30  }
  0x2c   : > { %p585_p9 = scmp.ge.s32.totalorder %s809_s15, 1  ;;  %p156_p1 = scmp.lt.s32.totalorder %s809_s15, 3 }
  0x2e   : > { %p157_p3 = pnand %p585_p9, %p156_p1 }
  0x2f   : > { %s946_s5 = sand.u32 (!%p157_p3), 1, %s801_s13  }
  0x30   : > { %160 = sbr.rel (%p157_p3) target bundleno = 944 (0x3b0), region = 32  ;;  %s586_s9 = sshll.u32 (!%p157_p3), %s946_s5, 6 }
  0x31   : > { %s163_s10 = scalar_lea.sflag (!%p157_p3), [#allocation3], %s946_s5  ;;  %s166_s11 = scalar_lea.vmem (!%p157_p3), [#allocation2], %s586_s9 }
  0x37   : > { %788 = dma.done.wait (%p885_p6), %s163_s10, 1024  }
  0x38   : > { %790 = vsyncadd (%p885_p6), %s163_s10, 4294966272  ;;  %v956_v0 = vld [vmem:[%s166_s11] sm:$0xff]  ;;  %v958_v1 = vld [vmem:[%s166_s11 + $0x8] sm:$0xff]  ;;  %v814_v16 = vmov 0.0|0.0   ;;  %vm815_vm0 = vmmov 0   ;;  %v816_v17 = vmov 0.0  }
  0x39   : > { %v960_v2 = vld [vmem:[%s166_s11 + $0x10] sm:$0xff]  ;;  %v213_v3 = vmax.f32 %v956_v0, %v958_v1  ;;  %v197_v4 = vadd.f32 %v958_v1, %v956_v0  ;;  %v966_v5 = vld [vmem:[%s166_s11 + $0x18] sm:$0xff]  ;;  %v976_v10 = vld [vmem:[%s166_s11 + $0x20] sm:$0xff]  ;;  %634 = vmatprep.subr.bf16.mxu0 %v814_v16  ;;  %623 = vmatprep.mubr.msk.f32.mxu0 %vm815_vm0, %v816_v17  ;;  %vm230_vm1 = vcmask 7168   ;;  %vm235_vm2 = vcmask 261120   ;;  %s817_s27 = smov 127  }
  0x3a   : > { %v216_v6 = vmax.f32 %v960_v2, %v966_v5  ;;  %v200_v7 = vadd.f32 %v966_v5, %v960_v2  ;;  %v972_v8 = vld [vmem:[%s166_s11 + $0x30] sm:$0xff]  ;;  %v974_v9 = vld [vmem:[%s166_s11 + $0x38] sm:$0xff]  ;;  %v978_v11 = vld [vmem:[%s166_s11 + $0x28] sm:$0xff]  ;;  %vm310_vm3 = vcmask 15360   ;;  %vm323_vm4 = vcmask 1041408   ;;  %s188_s28 = scalar_lea.vmem [#allocation5], %s586_s9 }
  0x3b   : > { %214 = vmax.xlane.f32.xlu1 %v213_v3  ;;  %198 = vadd.xlane.f32.xlu0 %v197_v4  ;;  %v206_v12 = vadd.f32 %v974_v9, %v972_v8  ;;  %v203_v13 = vadd.f32 %v978_v11, %v976_v10  ;;  %v222_v14 = vmax.f32 %v972_v8, %v974_v9  ;;  %v225_v36 = vld [vmem:[%s1064_s1] sm:$0x3]  ;;  %v227_v41 = vld [vmem:[%s1065_s2 + $0x8] sm:$0xff]  ;;  %v228_v42 = vld [vmem:[%s1065_s2 + $0x10] sm:$0xff]  ;;  %v818_v48 = vmov 0   ;;  %s506_s29 = sshll.u32 %s188_s28, 4  ;;  %s1012_s29 = int_to_ptr.vmem [resolvable:$true] %s506_s29 }
  0x3c   : > { %v219_v15 = vmax.f32 %v976_v10, %v978_v11  ;;  %v226_v37 = vld [vmem:[%s1065_s2] sm:$0xff]  ;;  %v229_v43 = vld [vmem:[%s1065_s2 + $0x18] sm:$0xff]  ;;  %695 = vset.pattern.permute.xlu1 %v818_v48  ;;  %696 = vset.pattern.permute.xlu0 %v818_v48  ;;  %s604_s30 = sshll.u32 %s863_s16, 10  ;;  %s493_s16 = scalar_lea.sflag [#allocation4], %s946_s5 }
  0x3d   : > { %628 = vmatprep.mubr.msk.f32.mxu1 %vm310_vm3, %v226_v37  ;;  %s1017_s11 = scalar_lea.hbm %s1066_s3, %s604_s30  ;;  %s743_s23 = scalar_lea.vmem %s1012_s29, 1024 }
  0x3e   : > { %p744_p6 = scmp.ne.s32.totalorder %s1012_s29, %s743_s23  ;;  %p1073_p11 = scmp.ne.s32.totalorder %s1070_s24, 0 }
  0x3f   : > { %217 = vmax.xlane.f32.xlu1 %v216_v6  ;;  %201 = vadd.xlane.f32.xlu0 %v200_v7  ;;  %s819_s4 = smov [#allocation5]  }
  0x40   : > { %p745_p12 = pnand %p744_p6, %p1073_p11  ;;  %s747_s6 = sshll.u32 %s819_s4, 4  ;;  %s748_s6 = int_to_ptr.vmem [resolvable:$false] %s747_s6 }
  0x41   : > { %s749_s7 = scalar_lea.vmem %s748_s6, 2048  ;;  %p750_p8 = scmp.lt.s32.totalorder %s1012_s29, %s748_s6 }
  0x42   : > { %p746_p13 = pneg %p745_p12  ;;  %p751_p10 = scmp.lt.s32.totalorder %s749_s7, %s743_s23 }
  0x43   : > { %207 = vadd.xlane.f32.xlu1 %v206_v12  ;;  %204 = vadd.xlane.f32.xlu0 %v203_v13 }
  0x44   : > { %p752_p0 = por %p751_p10, %p750_p8 }
  0x46   : > { %p753_p2 = pnand %p752_p0, %p746_p13 }
  0x47   : > { %223 = vmax.xlane.f32.xlu1 %v222_v14  ;;  %220 = vmax.xlane.f32.xlu0 %v219_v15 }
  0xc8   : > { %v215_v18 = vpop.xlane.xlu1 %214  ;;  %v199_v19 = vpop.xlane.xlu0 %198 }
  0xc9   : > { %v209_v20 = vmul.f32 0.00390625, %v199_v19 }
  0xcb   : > { %v231_v24 = vsel %vm230_vm1, %v209_v20, %v215_v18 }
  0xcc   : > { %v218_v21 = vpop.xlane.xlu1 %217  ;;  %v202_v22 = vpop.xlane.xlu0 %201 }
  0xcd   : > { %v210_v23 = vmul.f32 0.00390625, %v202_v22 }
  0xcf   : > { %v232_v25 = vsel %vm230_vm1, %v210_v23, %v218_v21 }
  0xd0   : > { %v208_v26 = vpop.xlane.xlu1 %207  ;;  %v205_v27 = vpop.xlane.xlu0 %204  ;;  %v635_v28 = vpack.c.bf16 %v232_v25, %v231_v24 }
  0xd1   : > { %v212_v29 = vmul.f32 0.00390625, %v208_v26  ;;  %v211_v30 = vmul.f32 0.00390625, %v205_v27 }
  0xd2   : > { %636 = vmatpush3.bf16.msra.mxu0 %v635_v28 }
  0xd3   : > { %637 = vmatprep.subr.bf16.mxu0 %v814_v16 }
  0xd4   : > { %v224_v31 = vpop.xlane.xlu1 %223  ;;  %v221_v32 = vpop.xlane.xlu0 %220 }
  0xd5   : > { %v234_v33 = vsel %vm230_vm1, %v212_v29, %v224_v31  ;;  %v233_v34 = vsel %vm230_vm1, %v211_v30, %v221_v32 }
  0xd6   : > { %v638_v35 = vpack.c.bf16 %v234_v33, %v233_v34 }
  0xd8   : > { %639 = vmatpush3.bf16.msra.mxu0 %v638_v35 }
  0xdb   : > { %624 = vmatmul.mubr.msk.f32.vlgmr.msra.gmra.mrb[0].mxu0 %vm235_vm2, %v225_v36 }
 0x1ae   : > { %v305_v38 = vpop.f32.mrb[0].mxu0 }
 0x1af   : > { %v309_v39 = vmax.f32 %v305_v38, 0.0  ;;  %v625_v40 = vpop.f32.mrb[1].mxu0 }
 0x1b1   : > { %626 = vmatprep.subr.msk.mxu1 %vm323_vm4, %v309_v39 }
 0x1b2   : > { %627 = vmatpush3.msk.msra.mxu1 %vm323_vm4, %v309_v39 }
 0x1b3   : > { %629 = vmatmul.mubr.msk.f32.vlgmr.msra.gmra.mrb[0].mxu1 %vm310_vm3, %v227_v41 }
 0x1b4   : > { %631 = vmatprep.mubr.msk.f32.mxu1 %vm310_vm3, %v228_v42 }
 0x1b7   : > { %632 = vmatmul.mubr.msk.f32.gmra.mrb[2].mxu1 %vm310_vm3, %v229_v43 }
 0x286   : > { %v630_v44 = vpop.f32.mrb[0].mxu1 }
 0x287   : > { %418 = vrot.lane.b32.xlu1 %v630_v44, %s817_s27  ;;  %v393_v45 = vpop.f32.mrb[1].mxu1 }
 0x288   : > { %416 = vrot.lane.b32.xlu0 %v393_v45, %s817_s27 }
 0x28a   : > { %v633_v46 = vpop.f32.mrb[2].mxu1 }
 0x28b   : > { %v403_v47 = vpop.f32.mrb[3].mxu1 }
 0x28c   : > { %420 = vrot.lane.b32.xlu1 %v403_v47, %s817_s27 }
 0x290   : > { %422 = vrot.lane.b32.xlu1 %v633_v46, %s817_s27 }
 0x2f9   : > { %v419_v49 = vpop.permute.xlu1 %418 }
 0x2fa   : > { %v429_v50 = vadd.f32 %v630_v44, %v419_v49  ;;  %v417_v51 = vpop.permute.xlu0 %416 }
 0x2fb   : > { %v428_v52 = vadd.f32 %v417_v51, %v393_v45 }
 0x2fc   : > { %v595_v53 = vmul.f32 -1.442695, %v429_v50 }
 0x2fd   : > { %v594_v54 = vmul.f32 -1.442695, %v428_v52 }
 0x2fe   : > { %697 = vpow2.f32 %v595_v53  ;;  %v421_v55 = vpop.permute.xlu1 %420 }
 0x2ff   : > { %699 = vpow2.f32 %v594_v54  ;;  %v430_v56 = vadd.f32 %v421_v55, %v403_v47 }
 0x301   : > { %v596_v57 = vmul.f32 -1.442695, %v430_v56 }
 0x302   : > { %v423_v58 = vpop.permute.xlu1 %422 }
 0x303   : > { %701 = vpow2.f32 %v596_v57  ;;  %v431_v59 = vadd.f32 %v633_v46, %v423_v58 }
 0x305   : > { %v597_v60 = vmul.f32 -1.442695, %v431_v59 }
 0x307   : > { %703 = vpow2.f32 %v597_v60 }
 0x308   : > { %v698_v61 = vpop.eup %697 }
 0x309   : > { %v700_v62 = vpop.eup %699  ;;  %v445_v63 = vadd.f32 1.0, %v698_v61 }
 0x30a   : > { %v444_v3 = vadd.f32 1.0, %v700_v62 }
 0x30b   : > { %705 = vrcp.f32 %v445_v63 }
 0x30c   : > { %707 = vrcp.f32 %v444_v3 }
 0x30d   : > { %v702_v4 = vpop.eup %701 }
 0x30e   : > { %v446_v6 = vadd.f32 1.0, %v702_v4 }
 0x310   : > { %709 = vrcp.f32 %v446_v6 }
 0x311   : > { %v704_v7 = vpop.eup %703 }
 0x312   : > { %v447_v12 = vadd.f32 1.0, %v704_v7 }
 0x314   : > { %711 = vrcp.f32 %v447_v12 }
 0x315   : > { %v706_v13 = vpop.eup %705 }
 0x316   : > { %v708_v14 = vpop.eup %707  ;;  %463 = vperm.xlu1 %695, %v706_v13  }
 0x317   : > { %458 = vperm.xlu0 %696, %v708_v14  }
 0x31a   : > { %v710_v15 = vpop.eup %709 }
 0x31b   : > { %468 = vperm.xlu1 %695, %v710_v15  }
 0x31e   : > { %v712_v16 = vpop.eup %711 }
 0x31f   : > { %473 = vperm.xlu0 %696, %v712_v16  }
 0x395   : > { %v464_v17 = vpop.permute.xlu1 %463 }
 0x396   : > { %v478_v18 = vmul.f32 %v464_v17, %v960_v2  ;;  %v479_v19 = vmul.f32 %v464_v17, %v966_v5  ;;  %v459_v20 = vpop.permute.xlu0 %458 }
 0x397   : > { %v476_v21 = vmul.f32 %v459_v20, %v956_v0  ;;  %v477_v22 = vmul.f32 %v459_v20, %v958_v1 }
 0x398   : > { %486 = vst [vmem:[%s188_s28 + $0x10] sm:$0xff] %v478_v18  ;;  %487 = vst [vmem:[%s188_s28 + $0x18] sm:$0xff] %v479_v19 }
 0x399   : > { %484 = vst [vmem:[%s188_s28] sm:$0xff] %v476_v21  ;;  %485 = vst [vmem:[%s188_s28 + $0x8] sm:$0xff] %v477_v22 }
 0x39a   : > { %v469_v23 = vpop.permute.xlu1 %468 }
 0x39b   : > { %v480_v24 = vmul.f32 %v469_v23, %v976_v10  ;;  %v481_v2 = vmul.f32 %v469_v23, %v978_v11 }
 0x39d   : > { %488 = vst [vmem:[%s188_s28 + $0x20] sm:$0xff] %v480_v24  ;;  %489 = vst [vmem:[%s188_s28 + $0x28] sm:$0xff] %v481_v2 }
 0x39e   : > { %v474_v0 = vpop.permute.xlu0 %473 }
 0x39f   : > { %v482_v1 = vmul.f32 %v474_v0, %v972_v8  ;;  %v483_v5 = vmul.f32 %v474_v0, %v974_v9 }
 0x3a1   : > { %490 = vst [vmem:[%s188_s28 + $0x30] sm:$0xff] %v482_v1  ;;  %491 = vst [vmem:[%s188_s28 + $0x38] sm:$0xff] %v483_v5 }
 0x3a2   : > { %756 = shalt.err (!%p753_p2)
}
 0x3a3   : > { %s757_s8 = scalar_lea.hbm %s1017_s11, 1024  ;;  %s761_s20 = scalar_lea.hbm %s1066_s3, 2048 }
 0x3a4   : > { %p758_p4 = scmp.ne.s32.totalorder %s1017_s11, %s757_s8  ;;  %p762_p9 = scmp.lt.u32.totalorder %s1017_s11, %s1066_s3 }
 0x3a5   : > { %p763_p1 = scmp.lt.u32.totalorder %s761_s20, %s757_s8  ;;  %p765_p6 = scmp.lt.u32.totalorder %s757_s8, %s1017_s11 }
 0x3a6   : > { %p759_p5 = pnand %p758_p4, %p1073_p11 }
 0x3a7   : > { %p764_p3 = por %p763_p1, %p762_p9 }
 0x3a8   : > { %p760_p7 = pneg %p759_p5 }
 0x3a9   : > { %p766_p12 = por %p765_p6, %p764_p3 }
 0x3ab   : > { %p767_p13 = pnand %p766_p12, %p760_p7 }
 0x3ad   : > { %770 = shalt.err (!%p767_p13)
}
 0x3ae   : > { %s820_s27 = smov 256   ;;  %s821_s28 = smov 16  }
 0x3af   : > { %642 = dma.vmem_to_hbm [thread:$0]  (%p1073_p11), %s1012_s29, 1024, %s1017_s11, %s493_s16, %s820_s27, %s820_s27, %s821_s28  }
 0x3b0 PF: > { %s521_s30 = sand.u32 1, %s797_s12   ;;  %p1074_p8 = scmp.ne.s32.totalorder %s1071_s25, 0 }
 0x3b1   : > { %p1075_p10 = scmp.ge.s32.totalorder %s809_s15, 2  ;;  %s522_s9 = scalar_lea.sflag [#allocation4], %s521_s30 }
 0x3b3   : > { %p649_p0 = pnand %p1075_p10, %p1074_p8 }
 0x3b5   : > { %792 = dma.done.wait (!%p649_p0), %s522_s9, 1024  }
 0x3b6   : > { %794 = vsyncadd (!%p649_p0), %s522_s9, 4294966272  ;;  %p16_p2 = scmp.ge.s32.totalorder %s867_s18, 4   ;;  %s1076_s12 = smov %s801_s13 }
 0x3b7   : > { %s1077_s13 = smov %s805_s14  ;;  %s1078_s14 = smov %s879_s21 }
 0x3b8   : > { %s1079_s15 = smov %s867_s18  ;;  %18 = sbr.rel (!%p16_p2) target bundleno = 5 (0x5), region = 77 }
 0x3bf   :  { %527 = vsyncpa [#allocation3], 1 }
 0x3c0   :  { %529 = vsyncpa [#allocation3 + $0x1], 1 }
 0x3c1   :  { %530 = vsyncpa [#allocation4], 1 }
 0x3c2   :  { %532 = vsyncpa [#allocation4 + $0x1], 1 }

</bundles_post_ra>
